<compile_context>
chip_gen: v6e
topology: v6e:2x2x1
jax: 0.10.0
libtpu: 0.0.40
codegen_flags: <defaults>
</compile_context>

<pallas_src>
import math

import numpy as np
import jax
import jax.numpy as jnp
from jax.experimental import pallas as pl
from jax.experimental.pallas import tpu as pltpu

_EPS = float(np.finfo(np.float32).eps)


def _vbn_kernel(x_ref, ab_ref, o_ref):
    # Single fused multiply-add per element; f32 math, cast on store.
    x = x_ref[...].astype(jnp.float32)
    a = ab_ref[0:1, :]            # (1, lane_tile) f32, broadcasts over rows
    b = ab_ref[1:2, :]
    o_ref[...] = (x * a + b).astype(o_ref.dtype)


def _pick_lane_tile(p_dim):
    # Full extent for modest / unaligned feature widths; otherwise a near-2048
    # lane tile (exact divisor preferred, else cdiv grid + masked last block).
    if p_dim % 128 != 0 or p_dim <= 4096:
        return p_dim
    for cand in range(2048, 1023, -128):
        if p_dim % cand == 0:
            return cand
    return 2048  # masked final lane block


def vbn_forward(x, effective_mean, effective_std, scale, shift):
    """Apply VBN along the last axis of x (per-feature params of shape (dim,))."""
    orig_shape = x.shape
    dim = orig_shape[-1]
    assert effective_mean.shape == (dim,)
    out_dtype = x.dtype

    # ---- Fold the four per-feature vectors into FMA coefficients (f32). ----
    a = scale.astype(jnp.float32) / (effective_std.astype(jnp.float32) + _EPS)
    b = shift.astype(jnp.float32) - effective_mean.astype(jnp.float32) * a

    x2d = x.reshape(-1, dim)
    rows = x2d.shape[0]

    # ---- Lane-dense packing: widen the lane axis to a multiple of 128. ----
    k = 1
    if dim % 128 != 0:
        k_min = 128 // math.gcd(dim, 128)
        if rows % k_min == 0:
            k = k_min
    if k > 1:
        x2d = x2d.reshape(rows // k, k * dim)   # pure reshape (contiguous data)
        a = jnp.tile(a, k)
        b = jnp.tile(b, k)
    p_rows, p_dim = x2d.shape
    ab = jnp.stack([a, b], axis=0)              # (2, p_dim) single resident param block

    # ---- Tile selection: ~8 MiB input tiles (HBM-bandwidth bound). --------
    lane_tile = _pick_lane_tile(p_dim)
    itemsize = x2d.dtype.itemsize
    target_tile_bytes = 8 * 1024 * 1024
    row_tile = target_tile_bytes // max(lane_tile * itemsize, 1)
    row_tile = max(8, min(16384, (row_tile // 8) * 8))

    if p_rows <= row_tile:
        # Small input: no padding.  Prefer 2 row blocks (keeps both v7x
        # TensorCores busy); otherwise one full-extent block (legal even when
        # p_rows is not a multiple of 8).
        half8 = pl.cdiv(pl.cdiv(p_rows, 2), 8) * 8
        row_tile = half8 if half8 < p_rows else p_rows

    # Lane axis is the OUTER grid dim so the param block index (0, j) is
    # constant across all inner (row) steps -> param DMA issued once per j.
    grid = (pl.cdiv(p_dim, lane_tile), pl.cdiv(p_rows, row_tile))

    # ---- VMEM budget: double-buffered in/out tiles + tiny param block. ----
    tile_in = row_tile * lane_tile * itemsize
    tile_out = row_tile * lane_tile * jnp.dtype(out_dtype).itemsize
    tile_ab = 2 * lane_tile * 4
    needed = 2 * (tile_in + tile_out + tile_ab)
    try:
        vmem_cap = int(pltpu.get_tpu_info().vmem_capacity_bytes)
    except Exception:
        vmem_cap = 64 << 20                      # v7x-safe assumption
    vmem_limit = int(min(max(needed + (4 << 20), 32 << 20), (vmem_cap * 3) // 4))

    out2d = pl.pallas_call(
        _vbn_kernel,
        out_shape=jax.ShapeDtypeStruct((p_rows, p_dim), out_dtype),
        grid_spec=pl.GridSpec(
            grid=grid,
            in_specs=[
                pl.BlockSpec((row_tile, lane_tile), lambda j, i: (i, j)),  # x
                pl.BlockSpec((2, lane_tile), lambda j, i: (0, j)),         # [a; b]
            ],
            out_specs=pl.BlockSpec((row_tile, lane_tile), lambda j, i: (i, j)),
        ),
        compiler_params=pltpu.CompilerParams(
            dimension_semantics=("parallel", "parallel"),
            vmem_limit_bytes=vmem_limit,
        ),
    )(x2d, ab)

    if k > 1:
        out2d = out2d.reshape(rows, dim)
    return out2d.reshape(orig_shape)


if __name__ == "__main__":
    # Deterministic parameter init mirroring the module's __init__
    # (vbn_init_fixed=False branch: scale/shift ~ normal; mean=0, std=1).
    key = jax.random.PRNGKey(0)
    k_x, k_scale, k_shift, k_x2, k_s2, k_sh2 = jax.random.split(key, 6)

    # Test 1: module-consistent small shape (batch=2, seq=8, hidden=32);
    # exercises the lane-dense packing path (32 -> 128 lanes).
    dim = 32
    x = jax.random.normal(k_x, (2, 8, dim), dtype=jnp.float32)
    scale = jax.random.normal(k_scale, (dim,), dtype=jnp.float32)
    shift = jax.random.normal(k_shift, (dim,), dtype=jnp.float32)
    effective_mean = jnp.zeros((dim,), dtype=jnp.float32)
    effective_std = jnp.ones((dim,), dtype=jnp.float32)

    out = jax.block_until_ready(
        vbn_forward(x, effective_mean, effective_std, scale, shift))
    # Folding params into a single FMA changes rounding order by a few ULPs
    # vs the unfused reference expression -> slightly loosened tolerance.
    ref = ((x - effective_mean) / (effective_std + _EPS)) * scale + shift
    np.testing.assert_allclose(np.asarray(out), np.asarray(ref),
                               rtol=1e-5, atol=1e-5)

    # Test 2: ragged row count + non-128 dim with no packing -> exercises the
    # masked boundary row block (no pad, no slice).
    dim2 = 96
    x2 = jax.random.normal(k_x2, (37, dim2), dtype=jnp.float32)
    scale2 = jax.random.normal(k_s2, (dim2,), dtype=jnp.float32)
    shift2 = jax.random.normal(k_sh2, (dim2,), dtype=jnp.float32)
    mean2 = jnp.zeros((dim2,), dtype=jnp.float32)
    std2 = jnp.ones((dim2,), dtype=jnp.float32)

    out2 = jax.block_until_ready(vbn_forward(x2, mean2, std2, scale2, shift2))
    ref2 = ((x2 - mean2) / (std2 + _EPS)) * scale2 + shift2
    np.testing.assert_allclose(np.asarray(out2), np.asarray(ref2),
                               rtol=1e-5, atol=1e-5)

    print("KERNEL_OK")
</pallas_src>

<mosaic_0001>
module attributes {stable_mosaic.version = 11 : i64} {
  func.func @_vbn_kernel(%arg0: i32, %arg1: i32, %arg2: memref<4x128xf32, #tpu.memory_space<vmem>>, %arg3: memref<2x128xf32, #tpu.memory_space<vmem>>, %arg4: memref<4x128xf32, #tpu.memory_space<vmem>>) attributes {dimension_semantics = [#tpu.dimension_semantics<parallel>, #tpu.dimension_semantics<parallel>], iteration_bounds = array<i64: 1, 1>, scalar_prefetch = 0 : i64, scratch_operands = 0 : i64, tpu.core_type = #tpu.core_type<tc>, window_params = [{transform_indices = @transform_0, window_bounds = array<i64: 4, 128>}, {transform_indices = @transform_1, window_bounds = array<i64: 2, 128>}, {transform_indices = @transform_2, window_bounds = array<i64: 4, 128>}]} {
    %c0 = arith.constant 0 : index
    %c0_0 = arith.constant 0 : index
    %0 = vector.load %arg2[%c0, %c0_0] : memref<4x128xf32, #tpu.memory_space<vmem>>, vector<4x128xf32>
    %c0_1 = arith.constant 0 : index
    %c0_2 = arith.constant 0 : index
    %1 = vector.load %arg3[%c0_1, %c0_2] : memref<2x128xf32, #tpu.memory_space<vmem>>, vector<1x128xf32>
    %c1 = arith.constant 1 : index
    %c0_3 = arith.constant 0 : index
    %2 = vector.load %arg3[%c1, %c0_3] : memref<2x128xf32, #tpu.memory_space<vmem>>, vector<1x128xf32>
    %3 = vector.broadcast %1 : vector<1x128xf32> to vector<4x128xf32>
    %4 = arith.mulf %0, %3 : vector<4x128xf32>
    %5 = vector.broadcast %2 : vector<1x128xf32> to vector<4x128xf32>
    %6 = arith.addf %4, %5 : vector<4x128xf32>
    %c0_4 = arith.constant 0 : index
    %c0_5 = arith.constant 0 : index
    %7 = vector.load %arg4[%c0_4, %c0_5] : memref<4x128xf32, #tpu.memory_space<vmem>>, vector<4x128xf32>
    tpu.vector_store %arg4[%c0_4, %c0_5], %6 {strides = array<i32>} : memref<4x128xf32, #tpu.memory_space<vmem>>, vector<4x128xf32>,
    return
  }
  func.func @transform_0(%arg0: i32, %arg1: i32) -> (i32, i32) {
    %c0_i32 = arith.constant 0 : i32
    return %arg1, %arg0 : i32, i32
  }
  func.func @transform_1(%arg0: i32, %arg1: i32) -> (i32, i32) {
    %c0_i32 = arith.constant 0 : i32
    %c0_i32_0 = arith.constant 0 : i32
    return %c0_i32, %arg0 : i32, i32
  }
  func.func @transform_2(%arg0: i32, %arg1: i32) -> (i32, i32) {
    %c0_i32 = arith.constant 0 : i32
    return %arg1, %arg0 : i32, i32
  }
}

</mosaic_0001>

<bundles_post_ra>
// kernel: tpu_custom_call.1
= control target key start
LH: loop header
LB: loop body
LE: loop exit
PB: predicated region body
PF: predicated region fallthrough
CT: control target
= control target key end

     0   :  { %7 = vsyncpa [#allocation3], 0  ;;  %s164_s0 = inlined_call_operand.hbm [shape: f32[4,128], index: 0, kind: input, shape index: {}]   ;;  %s165_s1 = inlined_call_operand.hbm [shape: f32[2,128], index: 1, kind: input, shape index: {}]   ;;  %s166_s2 = inlined_call_operand.hbm [shape: f32[4,128], index: 2, kind: output, shape index: {}]  }
   0x1   :  { %8 = vsyncpa [#allocation6], 0 }
   0x2   :  { %9 = vsyncpa [#allocation4], 0  ;;  %s137_s9 = smov [#allocation2]   ;;  %s138_s11 = smov [#allocation5]  }
   0x3   :  { %s16_s10 = sshll.u32 %s137_s9, 4  ;;  %s26_s12 = sshll.u32 %s138_s11, 4  ;;  %s17_s10 = int_to_ptr.vmem [resolvable:$true] %s16_s10  ;;  %s27_s12 = int_to_ptr.vmem [resolvable:$true] %s26_s12 }
   0x4   :  { %s79_s13 = scalar_lea.vmem %s17_s10, 64  ;;  %p84_p1 = scmp.lt.s32.totalorder %s17_s10, %s17_s10 }
   0x5   :  { %p80_p0 = scmp.ne.s32.totalorder %s17_s10, %s79_s13  ;;  %p85_p2 = scmp.lt.s32.totalorder %s79_s13, %s79_s13 }
   0x7   :  { %p86_p3 = por %p85_p2, %p84_p1 }
   0x9   :  { %p87_p4 = pnand %p86_p3, %p80_p0 }
   0xb   :  { %90 = shalt.err (!%p87_p4)
}
   0xc   :  { %19 = dma.hbm_to_vmem [thread:$0]  %s164_s0, 64, %s17_s10, [#allocation3]  }
   0xd   :  { %s99_s16 = scalar_lea.vmem %s27_s12, 32  ;;  %p104_p6 = scmp.lt.s32.totalorder %s27_s12, %s27_s12 }
   0xe   :  { %p100_p5 = scmp.ne.s32.totalorder %s27_s12, %s99_s16  ;;  %p105_p7 = scmp.lt.s32.totalorder %s99_s16, %s99_s16 }
  0x10   :  { %p106_p8 = por %p105_p7, %p104_p6 }
  0x12   :  { %p107_p9 = pnand %p106_p8, %p100_p5 }
  0x14   :  { %110 = shalt.err (!%p107_p9)
}
  0x15   :  { %29 = dma.hbm_to_vmem [thread:$0]  %s165_s1, 32, %s27_s12, [#allocation6]  }
  0x16   :  { %131 = dma.done.wait [#allocation3], 64  }
  0x17   :  { %132 = vsyncadd [#allocation3], 4294967232 }
  0x18   :  { %133 = dma.done.wait [#allocation6], 32  }
  0x19   :  { %134 = vsyncadd [#allocation6], 4294967264  ;;  %s139_s19 = smov [#allocation7]   ;;  %v36_v0 = vld [vmem:[#allocation2] sm:$0xf] }
  0x1a   :  { %s56_s20 = sshll.u32 %s139_s19, 4  ;;  %v66_v1 = vld [vmem:[#allocation5] ss:$0 sm:$0xff]  ;;  %v67_v2 = vld [vmem:[#allocation5 + $0x1] ss:$0 sm:$0xff]  ;;  %s57_s20 = int_to_ptr.vmem [resolvable:$true] %s56_s20 }
  0x1b   :  { %v43_v3 = vmul.f32 %v66_v1, %v36_v0  ;;  %s111_s0 = scalar_lea.vmem %s57_s20, 64  ;;  %p116_p11 = scmp.lt.s32.totalorder %s57_s20, %s57_s20 }
  0x1c   :  { %p112_p10 = scmp.ne.s32.totalorder %s57_s20, %s111_s0  ;;  %p117_p12 = scmp.lt.s32.totalorder %s111_s0, %s111_s0 }
  0x1d   :  { %v48_v4 = vadd.f32 %v67_v2, %v43_v3 }
  0x1e   :  { %p118_p13 = por %p117_p12, %p116_p11 }
  0x1f   :  { %49 = vst [vmem:[#allocation7] sm:$0xf] %v48_v4 }
  0x20   :  { %p119_p0 = pnand %p118_p13, %p112_p10 }
  0x22   :  { %122 = shalt.err (!%p119_p0)
}
  0x23   :  { %59 = dma.vmem_to_hbm [thread:$0]  %s57_s20, 64, %s166_s2, [#allocation4]  }
  0x24   :  { %135 = dma.done.wait [#allocation4], 64  }
  0x25   :  { %136 = vsyncadd [#allocation4], 4294967232 }
  0x26   :  { %63 = vsyncpa [#allocation3], 1 }
  0x27   :  { %64 = vsyncpa [#allocation6], 1 }
  0x28   :  { %65 = vsyncpa [#allocation4], 1 }

</bundles_post_ra>
